<compile_context>
chip_gen: v7x
topology: tpu7x:2x2x1
jax: 0.10.0
libtpu: 0.0.40
codegen_flags: <defaults>
</compile_context>

<pallas_src>
import functools

import jax
import jax.numpy as jnp
from jax.experimental import pallas as pl
from jax.experimental.pallas import tpu as pltpu


LANE = 128      # lane width: hidden dims padded to a multiple of this
SUBLANE = 16    # 2nd-minor alignment safe for bf16 (16) and f32 (8) tiles


def _round_up(x, m):
    return ((x + m - 1) // m) * m


def _elu(x):
    # ELU, alpha=1.0 (PyTorch default). The exp branch is discarded by the
    # where for x > 0, so there is no NaN risk (inf selected away is safe).
    return jnp.where(x > 0, x, jnp.exp(x) - 1.0)


# --------------------------------------------------------------------------
# Kernels
# --------------------------------------------------------------------------
def _mlp_body(x_f32, w_ref, b_ref):
    """Shared MLP body.

    x_f32: (tb, Fp) f32 layer-0 activations (Fp <= D, zero-padded).
    w_ref: (L*D, D) bf16 packed weight slab (layer i at rows [i*D, i*D+din_i)).
    b_ref: (L, D) f32 packed bias slab.
    Returns sigmoid(logit) as (tb, 1) f32.
    """
    D = w_ref.shape[-1]
    L = b_ref.shape[0]
    Fp = x_f32.shape[-1]

    # Layer 0: contract only the (padded-to-16) real feature rows of the slab.
    h = jnp.dot(x_f32.astype(jnp.bfloat16), w_ref[pl.ds(0, Fp), :],
                preferred_element_type=jnp.float32) + b_ref[pl.ds(0, 1), :]
    for i in range(1, L):                      # static unroll (L small)
        h = _elu(h)
        w = w_ref[pl.ds(i * D, D), :]          # (D, D) bf16, aligned slice
        b = b_ref[pl.ds(i, 1), :]              # (1, D) f32
        h = jnp.dot(h.astype(jnp.bfloat16), w,
                    preferred_element_type=jnp.float32) + b
    logit = h[:, :1]                           # real logit is column 0
    return 1.0 / (1.0 + jnp.exp(-logit))       # exact sigmoid (width 1: cheap)


def _forward_kernel(x_ref, w_ref, b_ref, out_ref):
    """x_ref: (tb, Fp) bf16 (features incl. treatment), out_ref: (tb, 1) f32."""
    res = _mlp_body(x_ref[...].astype(jnp.float32), w_ref, b_ref)
    out_ref[...] = res.astype(out_ref.dtype)


def _predict_kernel(feat_col, x_ref, w_ref, b_ref, out_ref):
    """Fused predict(): treatment value comes from grid axis 1 (0 or 1) and is
    written into column `feat_col` in-kernel; x tile stays resident across it."""
    t_val = pl.program_id(1).astype(jnp.float32)
    xv = x_ref[...].astype(jnp.float32)
    col = jax.lax.broadcasted_iota(jnp.int32, xv.shape, 1)
    xv = jnp.where(col == feat_col, t_val, xv)
    res = _mlp_body(xv, w_ref, b_ref)
    out_ref[...] = res.astype(out_ref.dtype)


# --------------------------------------------------------------------------
# Parameter construction / packing
# --------------------------------------------------------------------------
def make_slearner_params(key, input_dim, h_dim, num_layers):
    """Deterministic f32 params matching SLearner.__init__ layer shapes."""
    layer_cfg = [h_dim, h_dim, h_dim // 2, h_dim // 2, h_dim // 4, 1]
    dims = [(input_dim, layer_cfg[0])]
    for _ in range(num_layers - len(layer_cfg)):
        dims.append((h_dim, h_dim))
    for i in range(1, len(layer_cfg)):
        dims.append((layer_cfg[i - 1], layer_cfg[i]))

    params = []
    for (din, dout) in dims:
        key, kw, kb = jax.random.split(key, 3)
        bound = 1.0 / jnp.sqrt(jnp.float32(din))
        w = jax.random.uniform(kw, (din, dout), jnp.float32, -bound, bound)
        b = jax.random.uniform(kb, (1, dout), jnp.float32, -bound, bound)
        params.append((w, b))
    return params


def pack_params(params):
    """Pack all layers into one bf16 weight slab and one f32 bias slab,
    zero-padded to the 128 lane width. Zero padding keeps the math exact."""
    all_dims = []
    for w, _ in params:
        all_dims.extend(w.shape)
    D = _round_up(max(all_dims), LANE)
    L = len(params)

    w_packed = jnp.zeros((L * D, D), jnp.bfloat16)
    b_packed = jnp.zeros((L, D), jnp.float32)
    for i, (w, b) in enumerate(params):
        din, dout = w.shape
        w_packed = w_packed.at[i * D:i * D + din, :dout].set(
            w.astype(jnp.bfloat16))
        b_packed = b_packed.at[i, :dout].set(
            b.reshape(-1).astype(jnp.float32))
    return w_packed, b_packed


# --------------------------------------------------------------------------
# Tiling / cost helpers
# --------------------------------------------------------------------------
def _choose_tile(B, tile_b):
    b_al = _round_up(max(int(B), 1), SUBLANE)
    tb = min(_round_up(int(tile_b), SUBLANE), b_al)
    # Ensure >= 2 batch-grid steps whenever the batch allows it, so both of
    # v7x's TensorCores get work (harmless on single-TC v5e/v6e).
    if b_al // tb < 2 and b_al >= 2 * SUBLANE:
        tb = _round_up(-(-b_al // 2), SUBLANE)
    B_pad = _round_up(b_al, tb)
    return tb, B_pad


def _vmem_limit_bytes(tb, Fp, D, param_bytes):
    tile_io = tb * Fp * 2 + tb * 4             # bf16 x tile + f32 out tile
    act = tb * D * 6                           # f32 activation + bf16 copy
    est = 2 * param_bytes + 4 * tile_io + 2 * act + (4 << 20)
    return int(min(max(est, 16 << 20), 48 << 20))


def _cost(B_pad, Fp, D, L, param_bytes, n_variants):
    flops = 2 * B_pad * n_variants * (Fp * D + (L - 1) * D * D)
    transcendentals = B_pad * n_variants * ((L - 1) * D + 1)
    bytes_accessed = B_pad * Fp * 2 + param_bytes + n_variants * B_pad * 4
    return pl.CostEstimate(flops=int(flops),
                           transcendentals=int(transcendentals),
                           bytes_accessed=int(bytes_accessed))


# --------------------------------------------------------------------------
# Wrappers
# --------------------------------------------------------------------------
def slearner_forward(x, w_packed, b_packed, *, tile_b=4096):
    """Pallas-backed forward: out = sigmoid(MLP(x)), shape (B, 1) f32."""
    B, F = x.shape
    D = w_packed.shape[-1]
    L = b_packed.shape[0]
    Fp = _round_up(F, SUBLANE)
    assert Fp <= D, "input feature dim exceeds packed lane width"

    tb, B_pad = _choose_tile(B, tile_b)
    x_pad = jnp.zeros((B_pad, Fp), jnp.bfloat16)
    x_pad = x_pad.at[:B, :F].set(x.astype(jnp.bfloat16))

    param_bytes = w_packed.size * 2 + b_packed.size * 4
    out = pl.pallas_call(
        _forward_kernel,
        out_shape=jax.ShapeDtypeStruct((B_pad, 1), jnp.float32),
        grid=(B_pad // tb,),
        in_specs=[
            pl.BlockSpec((tb, Fp), lambda i: (i, 0)),        # x: batch-tiled
            pl.BlockSpec((L * D, D), lambda i: (0, 0)),      # weights resident
            pl.BlockSpec((L, D), lambda i: (0, 0)),          # biases resident
        ],
        out_specs=pl.BlockSpec((tb, 1), lambda i: (i, 0)),   # width-1 column
        compiler_params=pltpu.CompilerParams(
            dimension_semantics=("parallel",),
            vmem_limit_bytes=_vmem_limit_bytes(tb, Fp, D, param_bytes)),
        cost_estimate=_cost(B_pad, Fp, D, L, param_bytes, 1),
    )(x_pad, w_packed, b_packed)
    return out[:B]


def slearner_predict(x_feat, w_packed, b_packed, *, tile_b=4096):
    """Fused predict(): t=0 and t=1 in ONE pallas_call via a treatment grid
    axis; returns (y_0, y_1), each (B, 1) f32."""
    B, x_dim = x_feat.shape
    F = x_dim + 1                               # + treatment column
    D = w_packed.shape[-1]
    L = b_packed.shape[0]
    Fp = _round_up(F, SUBLANE)
    assert Fp <= D, "input feature dim exceeds packed lane width"

    tb, B_pad = _choose_tile(B, tile_b)
    x_pad = jnp.zeros((B_pad, Fp), jnp.bfloat16)
    x_pad = x_pad.at[:B, :x_dim].set(x_feat.astype(jnp.bfloat16))

    param_bytes = w_packed.size * 2 + b_packed.size * 4
    kernel = functools.partial(_predict_kernel, x_dim)
    out = pl.pallas_call(
        kernel,
        out_shape=jax.ShapeDtypeStruct((2, B_pad, 1), jnp.float32),
        grid=(B_pad // tb, 2),                  # treatment axis is innermost:
                                                # x tile stays resident in VMEM
        in_specs=[
            pl.BlockSpec((tb, Fp), lambda i, t: (i, 0)),     # ignores t
            pl.BlockSpec((L * D, D), lambda i, t: (0, 0)),
            pl.BlockSpec((L, D), lambda i, t: (0, 0)),
        ],
        out_specs=pl.BlockSpec((None, tb, 1), lambda i, t: (t, i, 0)),
        compiler_params=pltpu.CompilerParams(
            dimension_semantics=("parallel", "arbitrary"),
            vmem_limit_bytes=_vmem_limit_bytes(tb, Fp, D, param_bytes)),
        cost_estimate=_cost(B_pad, Fp, D, L, param_bytes, 2),
    )(x_pad, w_packed, b_packed)
    return out[0, :B], out[1, :B]


# --------------------------------------------------------------------------
# Pure-JAX reference (mirrors the kernel's bf16-input / f32-accumulate math)
# --------------------------------------------------------------------------
def _reference_forward(x, params):
    h = x.astype(jnp.bfloat16).astype(jnp.float32)
    for i, (w, b) in enumerate(params):
        if i > 0:
            h = _elu(h)
        h = jnp.dot(h.astype(jnp.bfloat16), w.astype(jnp.bfloat16),
                    preferred_element_type=jnp.float32) + b
    return jax.nn.sigmoid(h)


if __name__ == "__main__":
    key = jax.random.PRNGKey(0)
    k_x, k_p = jax.random.split(key)

    x_dim = 8
    input_dim = x_dim + 1      # features + treatment indicator
    h_dim = 32
    num_layers = 6
    batch = 8

    params = make_slearner_params(k_p, input_dim, h_dim, num_layers)
    w_packed, b_packed = pack_params(params)

    x_feat = jax.random.normal(k_x, (batch, x_dim), dtype=jnp.float32)

    # Plain forward on the x_t1 branch (features + treatment column of ones).
    x_t1 = jnp.concatenate([x_feat, jnp.ones((batch, 1), jnp.float32)], axis=1)
    out = jax.block_until_ready(slearner_forward(x_t1, w_packed, b_packed))
    ref1 = _reference_forward(x_t1, params)
    assert out.shape == (batch, 1)
    assert jnp.allclose(out, ref1, atol=5e-3, rtol=5e-3), (out, ref1)

    # Fused predict(): both treatment variants in one pallas_call.
    y0, y1 = jax.block_until_ready(
        slearner_predict(x_feat, w_packed, b_packed))
    x_t0 = jnp.concatenate([x_feat, jnp.zeros((batch, 1), jnp.float32)],
                           axis=1)
    ref0 = _reference_forward(x_t0, params)
    assert y0.shape == (batch, 1) and y1.shape == (batch, 1)
    assert jnp.allclose(y0, ref0, atol=5e-3, rtol=5e-3), (y0, ref0)
    assert jnp.allclose(y1, ref1, atol=5e-3, rtol=5e-3), (y1, ref1)

    print("KERNEL_OK")
</pallas_src>

<mosaic_0001>
module attributes {stable_mosaic.version = 11 : i64} {
  func.func @_forward_kernel(%arg0: i32, %arg1: memref<16x16xbf16, #tpu.memory_space<vmem>>, %arg2: memref<768x128xbf16, #tpu.memory_space<vmem>>, %arg3: memref<6x128xf32, #tpu.memory_space<vmem>>, %arg4: memref<16x1xf32, #tpu.memory_space<vmem>>) attributes {dimension_semantics = [#tpu.dimension_semantics<parallel>], iteration_bounds = array<i64: 1>, scalar_prefetch = 0 : i64, scratch_operands = 0 : i64, tpu.core_type = #tpu.core_type<tc>, window_params = [{transform_indices = @transform_0, window_bounds = array<i64: 16, 16>}, {pipeline_mode = #tpu.pipeline_mode<synchronous>, transform_indices = @transform_1, window_bounds = array<i64: 768, 128>}, {pipeline_mode = #tpu.pipeline_mode<synchronous>, transform_indices = @transform_2, window_bounds = array<i64: 6, 128>}, {transform_indices = @transform_3, window_bounds = array<i64: 16, 1>}]} {
    %c0 = arith.constant 0 : index
    %c0_0 = arith.constant 0 : index
    %0 = vector.load %arg1[%c0, %c0_0] : memref<16x16xbf16, #tpu.memory_space<vmem>>, vector<16x16xbf16>
    %1 = arith.extf %0 : vector<16x16xbf16> to vector<16x16xf32>
    %2 = arith.truncf %1 : vector<16x16xf32> to vector<16x16xbf16>
    %c0_1 = arith.constant 0 : index
    %c0_2 = arith.constant 0 : index
    %3 = vector.load %arg2[%c0_1, %c0_2] : memref<768x128xbf16, #tpu.memory_space<vmem>>, vector<16x128xbf16>
    %cst = arith.constant dense<0.000000e+00> : vector<16x128xf32>
    %4 = tpu.matmul %2, %3, %cst {dimension_numbers = #tpu.dot_dimension_numbers<[1], [0], [0], [1], [0, 0, 1, 1], [], []>} : vector<16x16xbf16>, vector<16x128xbf16>, vector<16x128xf32> -> vector<16x128xf32>
    %c0_3 = arith.constant 0 : index
    %c0_4 = arith.constant 0 : index
    %5 = vector.load %arg3[%c0_3, %c0_4] : memref<6x128xf32, #tpu.memory_space<vmem>>, vector<1x128xf32>
    %6 = vector.broadcast %5 : vector<1x128xf32> to vector<16x128xf32>
    %7 = arith.addf %4, %6 : vector<16x128xf32>
    %cst_5 = arith.constant 0.000000e+00 : f32
    %8 = vector.broadcast %cst_5 : f32 to vector<16x128xf32>
    %9 = arith.cmpf ogt, %7, %8 : vector<16x128xf32>
    %10 = math.exp %7 : vector<16x128xf32>
    %cst_6 = arith.constant 1.000000e+00 : f32
    %11 = vector.broadcast %cst_6 : f32 to vector<16x128xf32>
    %12 = arith.subf %10, %11 : vector<16x128xf32>
    %13 = arith.select %9, %7, %12 : vector<16x128xi1>, vector<16x128xf32>
    %c128 = arith.constant 128 : index
    %c0_7 = arith.constant 0 : index
    %14 = vector.load %arg2[%c128, %c0_7] : memref<768x128xbf16, #tpu.memory_space<vmem>>, vector<128x128xbf16>
    %c1 = arith.constant 1 : index
    %c0_8 = arith.constant 0 : index
    %15 = vector.load %arg3[%c1, %c0_8] : memref<6x128xf32, #tpu.memory_space<vmem>>, vector<1x128xf32>
    %16 = arith.truncf %13 : vector<16x128xf32> to vector<16x128xbf16>
    %cst_9 = arith.constant dense<0.000000e+00> : vector<16x128xf32>
    %17 = tpu.matmul %16, %14, %cst_9 {dimension_numbers = #tpu.dot_dimension_numbers<[1], [0], [0], [1], [0, 0, 1, 1], [], []>} : vector<16x128xbf16>, vector<128x128xbf16>, vector<16x128xf32> -> vector<16x128xf32>
    %18 = vector.broadcast %15 : vector<1x128xf32> to vector<16x128xf32>
    %19 = arith.addf %17, %18 : vector<16x128xf32>
    %cst_10 = arith.constant 0.000000e+00 : f32
    %20 = vector.broadcast %cst_10 : f32 to vector<16x128xf32>
    %21 = arith.cmpf ogt, %19, %20 : vector<16x128xf32>
    %22 = math.exp %19 : vector<16x128xf32>
    %cst_11 = arith.constant 1.000000e+00 : f32
    %23 = vector.broadcast %cst_11 : f32 to vector<16x128xf32>
    %24 = arith.subf %22, %23 : vector<16x128xf32>
    %25 = arith.select %21, %19, %24 : vector<16x128xi1>, vector<16x128xf32>
    %c256 = arith.constant 256 : index
    %c0_12 = arith.constant 0 : index
    %26 = vector.load %arg2[%c256, %c0_12] : memref<768x128xbf16, #tpu.memory_space<vmem>>, vector<128x128xbf16>
    %c2 = arith.constant 2 : index
    %c0_13 = arith.constant 0 : index
    %27 = vector.load %arg3[%c2, %c0_13] : memref<6x128xf32, #tpu.memory_space<vmem>>, vector<1x128xf32>
    %28 = arith.truncf %25 : vector<16x128xf32> to vector<16x128xbf16>
    %cst_14 = arith.constant dense<0.000000e+00> : vector<16x128xf32>
    %29 = tpu.matmul %28, %26, %cst_14 {dimension_numbers = #tpu.dot_dimension_numbers<[1], [0], [0], [1], [0, 0, 1, 1], [], []>} : vector<16x128xbf16>, vector<128x128xbf16>, vector<16x128xf32> -> vector<16x128xf32>
    %30 = vector.broadcast %27 : vector<1x128xf32> to vector<16x128xf32>
    %31 = arith.addf %29, %30 : vector<16x128xf32>
    %cst_15 = arith.constant 0.000000e+00 : f32
    %32 = vector.broadcast %cst_15 : f32 to vector<16x128xf32>
    %33 = arith.cmpf ogt, %31, %32 : vector<16x128xf32>
    %34 = math.exp %31 : vector<16x128xf32>
    %cst_16 = arith.constant 1.000000e+00 : f32
    %35 = vector.broadcast %cst_16 : f32 to vector<16x128xf32>
    %36 = arith.subf %34, %35 : vector<16x128xf32>
    %37 = arith.select %33, %31, %36 : vector<16x128xi1>, vector<16x128xf32>
    %c384 = arith.constant 384 : index
    %c0_17 = arith.constant 0 : index
    %38 = vector.load %arg2[%c384, %c0_17] : memref<768x128xbf16, #tpu.memory_space<vmem>>, vector<128x128xbf16>
    %c3 = arith.constant 3 : index
    %c0_18 = arith.constant 0 : index
    %39 = vector.load %arg3[%c3, %c0_18] : memref<6x128xf32, #tpu.memory_space<vmem>>, vector<1x128xf32>
    %40 = arith.truncf %37 : vector<16x128xf32> to vector<16x128xbf16>
    %cst_19 = arith.constant dense<0.000000e+00> : vector<16x128xf32>
    %41 = tpu.matmul %40, %38, %cst_19 {dimension_numbers = #tpu.dot_dimension_numbers<[1], [0], [0], [1], [0, 0, 1, 1], [], []>} : vector<16x128xbf16>, vector<128x128xbf16>, vector<16x128xf32> -> vector<16x128xf32>
    %42 = vector.broadcast %39 : vector<1x128xf32> to vector<16x128xf32>
    %43 = arith.addf %41, %42 : vector<16x128xf32>
    %cst_20 = arith.constant 0.000000e+00 : f32
    %44 = vector.broadcast %cst_20 : f32 to vector<16x128xf32>
    %45 = arith.cmpf ogt, %43, %44 : vector<16x128xf32>
    %46 = math.exp %43 : vector<16x128xf32>
    %cst_21 = arith.constant 1.000000e+00 : f32
    %47 = vector.broadcast %cst_21 : f32 to vector<16x128xf32>
    %48 = arith.subf %46, %47 : vector<16x128xf32>
    %49 = arith.select %45, %43, %48 : vector<16x128xi1>, vector<16x128xf32>
    %c512 = arith.constant 512 : index
    %c0_22 = arith.constant 0 : index
    %50 = vector.load %arg2[%c512, %c0_22] : memref<768x128xbf16, #tpu.memory_space<vmem>>, vector<128x128xbf16>
    %c4 = arith.constant 4 : index
    %c0_23 = arith.constant 0 : index
    %51 = vector.load %arg3[%c4, %c0_23] : memref<6x128xf32, #tpu.memory_space<vmem>>, vector<1x128xf32>
    %52 = arith.truncf %49 : vector<16x128xf32> to vector<16x128xbf16>
    %cst_24 = arith.constant dense<0.000000e+00> : vector<16x128xf32>
    %53 = tpu.matmul %52, %50, %cst_24 {dimension_numbers = #tpu.dot_dimension_numbers<[1], [0], [0], [1], [0, 0, 1, 1], [], []>} : vector<16x128xbf16>, vector<128x128xbf16>, vector<16x128xf32> -> vector<16x128xf32>
    %54 = vector.broadcast %51 : vector<1x128xf32> to vector<16x128xf32>
    %55 = arith.addf %53, %54 : vector<16x128xf32>
    %cst_25 = arith.constant 0.000000e+00 : f32
    %56 = vector.broadcast %cst_25 : f32 to vector<16x128xf32>
    %57 = arith.cmpf ogt, %55, %56 : vector<16x128xf32>
    %58 = math.exp %55 : vector<16x128xf32>
    %cst_26 = arith.constant 1.000000e+00 : f32
    %59 = vector.broadcast %cst_26 : f32 to vector<16x128xf32>
    %60 = arith.subf %58, %59 : vector<16x128xf32>
    %61 = arith.select %57, %55, %60 : vector<16x128xi1>, vector<16x128xf32>
    %c640 = arith.constant 640 : index
    %c0_27 = arith.constant 0 : index
    %62 = vector.load %arg2[%c640, %c0_27] : memref<768x128xbf16, #tpu.memory_space<vmem>>, vector<128x128xbf16>
    %c5 = arith.constant 5 : index
    %c0_28 = arith.constant 0 : index
    %63 = vector.load %arg3[%c5, %c0_28] : memref<6x128xf32, #tpu.memory_space<vmem>>, vector<1x128xf32>
    %64 = arith.truncf %61 : vector<16x128xf32> to vector<16x128xbf16>
    %cst_29 = arith.constant dense<0.000000e+00> : vector<16x128xf32>
    %65 = tpu.matmul %64, %62, %cst_29 {dimension_numbers = #tpu.dot_dimension_numbers<[1], [0], [0], [1], [0, 0, 1, 1], [], []>} : vector<16x128xbf16>, vector<128x128xbf16>, vector<16x128xf32> -> vector<16x128xf32>
    %66 = vector.broadcast %63 : vector<1x128xf32> to vector<16x128xf32>
    %67 = arith.addf %65, %66 : vector<16x128xf32>
    %68 = vector.extract_strided_slice %67 {offsets = [0, 0], sizes = [16, 1], strides = [1, 1]} : vector<16x128xf32> to vector<16x1xf32>
    %cst_30 = arith.constant 0.000000e+00 : f32
    %69 = vector.broadcast %cst_30 : f32 to vector<16x1xf32>
    %70 = arith.subf %69, %68 : vector<16x1xf32>
    %71 = math.exp %70 : vector<16x1xf32>
    %cst_31 = arith.constant 1.000000e+00 : f32
    %72 = vector.broadcast %cst_31 : f32 to vector<16x1xf32>
    %73 = arith.addf %72, %71 : vector<16x1xf32>
    %cst_32 = arith.constant 1.000000e+00 : f32
    %74 = vector.broadcast %cst_32 : f32 to vector<16x1xf32>
    %75 = arith.divf %74, %73 : vector<16x1xf32>
    %c0_33 = arith.constant 0 : index
    %c0_34 = arith.constant 0 : index
    %76 = vector.load %arg4[%c0_33, %c0_34] : memref<16x1xf32, #tpu.memory_space<vmem>>, vector<16x1xf32>
    tpu.vector_store %arg4[%c0_33, %c0_34], %75 {strides = array<i32>} : memref<16x1xf32, #tpu.memory_space<vmem>>, vector<16x1xf32>,
    return
  }
  func.func @transform_0(%arg0: i32) -> (i32, i32) {
    %c0_i32 = arith.constant 0 : i32
    %c0_i32_0 = arith.constant 0 : i32
    return %arg0, %c0_i32 : i32, i32
  }
  func.func @transform_1(%arg0: i32) -> (i32, i32) {
    %c0_i32 = arith.constant 0 : i32
    %c0_i32_0 = arith.constant 0 : i32
    %c0_i32_1 = arith.constant 0 : i32
    return %c0_i32, %c0_i32_0 : i32, i32
  }
  func.func @transform_2(%arg0: i32) -> (i32, i32) {
    %c0_i32 = arith.constant 0 : i32
    %c0_i32_0 = arith.constant 0 : i32
    %c0_i32_1 = arith.constant 0 : i32
    return %c0_i32, %c0_i32_0 : i32, i32
  }
  func.func @transform_3(%arg0: i32) -> (i32, i32) {
    %c0_i32 = arith.constant 0 : i32
    %c0_i32_0 = arith.constant 0 : i32
    return %arg0, %c0_i32 : i32, i32
  }
}

</mosaic_0001>

<bundles_post_ra>
// kernel: tpu_custom_call.1
= control target key start
LH: loop header
LB: loop body
LE: loop exit
PB: predicated region body
PF: predicated region fallthrough
CT: control target
= control target key end

     0   :  { %8 = vsyncpa [#allocation3], 0  ;;  %s1233_s0 = inlined_call_operand.hbm [shape: bf16[16,16], index: 0, kind: input, shape index: {}]   ;;  %s1234_s1 = inlined_call_operand.hbm [shape: bf16[768,128], index: 1, kind: input, shape index: {}]   ;;  %s1235_s2 = inlined_call_operand.hbm [shape: f32[6,128], index: 2, kind: input, shape index: {}]   ;;  %s1236_s3 = inlined_call_operand.vmem [shape: f32[16,1], index: 3, kind: output, shape index: {}]  }
   0x1   :  { %9 = vsyncpa [#allocation5], 0  ;;  %s1104_s12 = smov [#allocation4]   ;;  %s1105_s14 = smov [#allocation2]  }
   0x2   :  { %s27_s13 = sshll.u32 %s1104_s12, 4  ;;  %s15_s15 = sshll.u32 %s1105_s14, 4  ;;  %s28_s13 = int_to_ptr.vmem [resolvable:$true] %s27_s13  ;;  %s1131_s15 = int_to_ptr.vmem [resolvable:$true] %s15_s15 }
   0x3   :  { %s1034_s18 = scalar_lea.hbm %s1234_s1, 6144 }
   0x4   :  { %p1035_p0 = scmp.ne.s32.totalorder %s1234_s1, %s1034_s18  ;;  %p1038_p1 = scmp.lt.u32.totalorder %s1034_s18, %s1234_s1 }
   0x6   :  { %p1040_p2 = pnand %p1038_p1, %p1035_p0 }
   0x8   :  { %1043 = shalt.err (!%p1040_p2)
}
   0x9   :  { %s1044_s23 = scalar_lea.vmem %s28_s13, 6144  ;;  %p1049_p4 = scmp.lt.s32.totalorder %s28_s13, %s28_s13 }
   0xa   :  { %p1045_p3 = scmp.ne.s32.totalorder %s28_s13, %s1044_s23  ;;  %p1050_p5 = scmp.lt.s32.totalorder %s1044_s23, %s1044_s23 }
   0xc   :  { %p1051_p6 = por %p1050_p5, %p1049_p4 }
   0xe   :  { %p1052_p7 = pnand %p1051_p6, %p1045_p3 }
  0x10   :  { %1055 = shalt.err (!%p1052_p7)
}
  0x11   :  { %s1106_s24 = smov 64   ;;  %s1107_s25 = smov 4  }
  0x12   :  { %33 = dma.hbm_to_vmem [thread:$0]  %s1234_s1, 6144, %s28_s13, [#allocation5], %s1106_s24, %s1106_s24, %s1107_s25  }
  0x13   :  { %s1056_s30 = scalar_lea.hbm %s1233_s0, 128 }
  0x14   :  { %p1057_p8 = scmp.ne.s32.totalorder %s1233_s0, %s1056_s30  ;;  %p1060_p9 = scmp.lt.u32.totalorder %s1056_s30, %s1233_s0 }
  0x16   :  { %p1062_p10 = pnand %p1060_p9, %p1057_p8 }
  0x18   :  { %1065 = shalt.err (!%p1062_p10)
}
  0x19   :  { %s1066_s8 = scalar_lea.vmem %s1131_s15, 128  ;;  %p1071_p12 = scmp.lt.s32.totalorder %s1131_s15, %s1131_s15 }
  0x1a   :  { %p1067_p11 = scmp.ne.s32.totalorder %s1131_s15, %s1066_s8  ;;  %p1072_p13 = scmp.lt.s32.totalorder %s1066_s8, %s1066_s8 }
  0x1c   :  { %p1073_p0 = por %p1072_p13, %p1071_p12 }
  0x1e   :  { %p1074_p1 = pnand %p1073_p0, %p1067_p11 }
  0x20   :  { %1077 = shalt.err (!%p1074_p1)
}
  0x21   :  { %21 = dma.hbm_to_vmem [thread:$0]  %s1233_s0, 128, %s1131_s15, [#allocation3], %s1106_s24, %s1106_s24, %s1107_s25  }
  0x22   :  { %s1108_s10 = smov [#allocation6]   ;;  %s1078_s14 = scalar_lea.hbm %s1235_s2, 128 }
  0x23   :  { %s40_s11 = sshll.u32 %s1108_s10, 4  ;;  %p1079_p2 = scmp.ne.s32.totalorder %s1235_s2, %s1078_s14  ;;  %s41_s11 = int_to_ptr.vmem [resolvable:$true] %s40_s11 }
  0x24   :  { %p1082_p3 = scmp.lt.u32.totalorder %s1078_s14, %s1235_s2 }
  0x26   :  { %p1084_p4 = pnand %p1082_p3, %p1079_p2 }
  0x28   :  { %1087 = shalt.err (!%p1084_p4)
}
  0x29   :  { %s1088_s20 = scalar_lea.vmem %s41_s11, 128  ;;  %p1093_p6 = scmp.lt.s32.totalorder %s41_s11, %s41_s11 }
  0x2a   :  { %p1089_p5 = scmp.ne.s32.totalorder %s41_s11, %s1088_s20  ;;  %p1094_p7 = scmp.lt.s32.totalorder %s1088_s20, %s1088_s20 }
  0x2c   :  { %p1095_p8 = por %p1094_p7, %p1093_p6 }
  0x2e   :  { %p1096_p9 = pnand %p1095_p8, %p1089_p5 }
  0x30   :  { %1099 = shalt.err (!%p1096_p9)
}
  0x31   :  { %43 = dma.hbm_to_vmem [thread:$0]  %s1235_s2, 128, %s41_s11, [#allocation5]  }
  0x32   :  { %1100 = dma.done.wait [#allocation3], 128  }
  0x33   :  { %1101 = vsyncadd [#allocation3], 4294967168 }
  0x34   :  { %1102 = dma.done.wait [#allocation5], 6272  }
  0x35   :  { %1103 = vsyncadd [#allocation5], 4294961024  ;;  %v1109_v0 = vmov 0.0   ;;  %vm1110_vm0 = vmmov 0   ;;  %v964_v1 = vld [vmem:[#allocation4] sm:$0xff]   ;;  %v965_v2 = vld [vmem:[#allocation2] sm:$0xff]  }
  0x36   :  { %851 = vmatprep.subr.bf16.mxu0 %v1109_v0  ;;  %853 = vmatprep.mubr.msk.bf16.mxu0 %vm1110_vm0, %v1109_v0  ;;  %vm74_vm1 = vcmask 130048   ;;  %v966_v3 = vld [vmem:[#allocation4 + $0x40] sm:$0xff]   ;;  %v967_v4 = vld [vmem:[#allocation4 + $0x48] sm:$0xff]   ;;  %v968_v5 = vld [vmem:[#allocation4 + $0x50] sm:$0xff]   ;;  %vm736_vm12 = vcmask 7168  }
  0x37   :  { %857 = vmatprep.subr.bf16.mxu1 %v1109_v0  ;;  %873 = vmatprep.mubr.msk.bf16.mxu1 %vm1110_vm0, %v1109_v0  ;;  %v969_v6 = vld [vmem:[#allocation4 + $0x58] sm:$0xff]   ;;  %v970_v7 = vld [vmem:[#allocation4 + $0x60] sm:$0xff]   ;;  %v971_v8 = vld [vmem:[#allocation4 + $0x68] sm:$0xff]  }
  0x38   :  { %852 = vmatpush3.bf16.msra.mxu0 %v964_v1  ;;  %858 = vmatpush3.bf16.msra.mxu1 %v966_v3  ;;  %v972_v9 = vld [vmem:[#allocation4 + $0x70] sm:$0xff]   ;;  %v973_v10 = vld [vmem:[#allocation4 + $0x78] sm:$0xff]   ;;  %v974_v11 = vld [vmem:[#allocation4 + $0x80] sm:$0xff]  }
  0x39   :  { %877 = vmatprep.subr.bf16.mxu0 %v1109_v0  ;;  %859 = vmatprep.subr.bf16.mxu1 %v1109_v0  ;;  %v975_v12 = vld [vmem:[#allocation4 + $0x88] sm:$0xff]   ;;  %v745_v13 = vld [vmem:[#allocation6] ss:$0 sm:$0xff]  ;;  %v976_v29 = vld [vmem:[#allocation4 + $0x90] sm:$0xff]  }
  0x3a   :  { %v977_v30 = vld [vmem:[#allocation4 + $0x98] sm:$0xff]   ;;  %v978_v31 = vld [vmem:[#allocation4 + $0xa0] sm:$0xff]   ;;  %v979_v32 = vld [vmem:[#allocation4 + $0xa8] sm:$0xff]  }
  0x3b   :  { %854 = vmatmul.mubr.msk.bf16.vlgmr.msra.gmra.mrb[0].mxu0 %vm74_vm1, %v965_v2  ;;  %v980_v33 = vld [vmem:[#allocation4 + $0xb0] sm:$0xff]   ;;  %v981_v34 = vld [vmem:[#allocation4 + $0xb8] sm:$0xff]   ;;  %v982_v35 = vld [vmem:[#allocation4 + $0xc0] sm:$0xff]  }
  0x3c   :  { %893 = vmatprep.mubr.msk.bf16.mxu0 %vm1110_vm0, %v1109_v0  ;;  %860 = vmatpush3.bf16.msra.mxu1 %v967_v4  ;;  %v983_v36 = vld [vmem:[#allocation4 + $0xc8] sm:$0xff]   ;;  %v751_v37 = vld [vmem:[#allocation6 + $0x1] ss:$0 sm:$0xff]  ;;  %v984_v53 = vld [vmem:[#allocation4 + $0xd0] sm:$0xff]  }
  0x3d   :  { %861 = vmatprep.subr.bf16.mxu1 %v1109_v0  ;;  %878 = vmatpush3.bf16.msra.mxu0 %v974_v11  ;;  %v985_v54 = vld [vmem:[#allocation4 + $0xd8] sm:$0xff]   ;;  %v986_v55 = vld [vmem:[#allocation4 + $0xe0] sm:$0xff]   ;;  %v987_v56 = vld [vmem:[#allocation4 + $0xe8] sm:$0xff]  }
  0x3e   :  { %879 = vmatprep.subr.bf16.mxu0 %v1109_v0  ;;  %v988_v57 = vld [vmem:[#allocation4 + $0xf0] sm:$0xff]   ;;  %v989_v58 = vld [vmem:[#allocation4 + $0xf8] sm:$0xff]   ;;  %v990_v59 = vld [vmem:[#allocation4 + $0x100] sm:$0xff]  }
  0x3f   :  { %v991_v60 = vld [vmem:[#allocation4 + $0x108] sm:$0xff]   ;;  %v762_v61 = vld [vmem:[#allocation6 + $0x2] ss:$0 sm:$0xff] }
  0x40   :  { %862 = vmatpush3.bf16.msra.mxu1 %v968_v5 }
  0x41   :  { %863 = vmatprep.subr.bf16.mxu1 %v1109_v0  ;;  %880 = vmatpush3.bf16.msra.mxu0 %v975_v12 }
  0x42   :  { %881 = vmatprep.subr.bf16.mxu0 %v1109_v0 }
  0x44   :  { %864 = vmatpush3.bf16.msra.mxu1 %v969_v6 }
  0x45   :  { %865 = vmatprep.subr.bf16.mxu1 %v1109_v0  ;;  %882 = vmatpush3.bf16.msra.mxu0 %v976_v29 }
  0x46   :  { %883 = vmatprep.subr.bf16.mxu0 %v1109_v0 }
  0x48   :  { %866 = vmatpush3.bf16.msra.mxu1 %v970_v7 }
  0x49   :  { %867 = vmatprep.subr.bf16.mxu1 %v1109_v0  ;;  %884 = vmatpush3.bf16.msra.mxu0 %v977_v30 }
  0x4a   :  { %885 = vmatprep.subr.bf16.mxu0 %v1109_v0 }
  0x4c   :  { %868 = vmatpush3.bf16.msra.mxu1 %v971_v8 }
  0x4d   :  { %869 = vmatprep.subr.bf16.mxu1 %v1109_v0  ;;  %886 = vmatpush3.bf16.msra.mxu0 %v978_v31 }
  0x4e   :  { %887 = vmatprep.subr.bf16.mxu0 %v1109_v0 }
  0x50   :  { %870 = vmatpush3.bf16.msra.mxu1 %v972_v9 }
  0x51   :  { %871 = vmatprep.subr.bf16.mxu1 %v1109_v0  ;;  %888 = vmatpush3.bf16.msra.mxu0 %v979_v32 }
  0x52   :  { %889 = vmatprep.subr.bf16.mxu0 %v1109_v0 }
  0x54   :  { %872 = vmatpush3.bf16.msra.mxu1 %v973_v10 }
  0x55   :  { %897 = vmatprep.subr.bf16.mxu1 %v1109_v0  ;;  %890 = vmatpush3.bf16.msra.mxu0 %v980_v33 }
  0x56   :  { %891 = vmatprep.subr.bf16.mxu0 %v1109_v0 }
  0x59   :  { %892 = vmatpush3.bf16.msra.mxu0 %v981_v34 }
  0x5a   :  { %917 = vmatprep.subr.bf16.mxu0 %v1109_v0 }
 0x10e   :  { %v112_v14 = vpop.f32.mrb[0].mxu0 }
 0x10f   :  { %v113_v15 = vadd.f32 %v745_v13, %v112_v14  ;;  %v855_v16 = vpop.f32.mrb[1].mxu0  ;;  %v992_v14 = vld [vmem:[#allocation4 + $0x110] sm:$0xff]  }
 0x110   :  { %v115_v17 = vpop.f32.mrb[2].mxu0  ;;  %v994_v16 = vld [vmem:[#allocation4 + $0x120] sm:$0xff]  }
 0x111   :  { %v121_v18 = vmul.f32 1.442695, %v113_v15  ;;  %v116_v19 = vadd.f32 %v745_v13, %v115_v17  ;;  %v856_v20 = vpop.f32.mrb[3].mxu0  ;;  %vm119_vm2 = vcmp.gt.f32.partialorder %v113_v15, 0.0  ;;  %v995_v17 = vld [vmem:[#allocation4 + $0x128] sm:$0xff]  }
 0x112   :  { %v998_v20 = vld [vmem:[#allocation4 + $0x140] sm:$0xff]  }
 0x113   :  { %1006 = vpow2.f32 %v121_v18  ;;  %v123_v21 = vmul.f32 1.442695, %v116_v19  ;;  %vm120_vm3 = vcmp.gt.f32.partialorder %v116_v19, 0.0  ;;  %v996_v18 = vld [vmem:[#allocation4 + $0x130] sm:$0xff]  }
 0x115   :  { %1008 = vpow2.f32 %v123_v21  ;;  %v999_v21 = vld [vmem:[#allocation4 + $0x148] sm:$0xff]  }
 0x11d   :  { %v1007_v22 = vpop.eup %1006 }
 0x11e   :  { %v749_v23 = vadd.f32 -1.0, %v1007_v22  ;;  %v773_v22 = vld [vmem:[#allocation6 + $0x3] ss:$0 sm:$0xff] }
 0x11f   :  { %v1009_v24 = vpop.eup %1008 }
 0x120   :  { %v750_v25 = vadd.f32 -1.0, %v1009_v24  ;;  %v127_v26 = vsel %vm119_vm2, %v113_v15, %v749_v23  ;;  %v993_v15 = vld [vmem:[#allocation4 + $0x118] sm:$0xff]  }
 0x122   :  { %v128_v27 = vsel %vm120_vm3, %v116_v19, %v750_v25  ;;  %v997_v19 = vld [vmem:[#allocation4 + $0x138] sm:$0xff]  }
 0x123   :  { %v146_v28 = vpack.c.bf16 %v128_v27, %v127_v26 }
 0x125   :  { %874 = vmatmul.mubr.bf16.vlgmr.msra.gmra.mrb[0].mxu1 %v146_v28 }
 0x126   :  { %913 = vmatprep.mubr.msk.bf16.mxu1 %vm1110_vm0, %v1109_v0  ;;  %898 = vmatpush3.bf16.msra.mxu1 %v982_v35 }
 0x127   :  { %899 = vmatprep.subr.bf16.mxu1 %v1109_v0 }
 0x12a   :  { %900 = vmatpush3.bf16.msra.mxu1 %v983_v36 }
 0x12b   :  { %901 = vmatprep.subr.bf16.mxu1 %v1109_v0 }
 0x12e   :  { %902 = vmatpush3.bf16.msra.mxu1 %v984_v53 }
 0x12f   :  { %903 = vmatprep.subr.bf16.mxu1 %v1109_v0 }
 0x132   :  { %904 = vmatpush3.bf16.msra.mxu1 %v985_v54 }
 0x133   :  { %905 = vmatprep.subr.bf16.mxu1 %v1109_v0 }
 0x136   :  { %906 = vmatpush3.bf16.msra.mxu1 %v986_v55 }
 0x137   :  { %907 = vmatprep.subr.bf16.mxu1 %v1109_v0 }
 0x13a   :  { %908 = vmatpush3.bf16.msra.mxu1 %v987_v56 }
 0x13b   :  { %909 = vmatprep.subr.bf16.mxu1 %v1109_v0 }
 0x13e   :  { %910 = vmatpush3.bf16.msra.mxu1 %v988_v57 }
 0x13f   :  { %911 = vmatprep.subr.bf16.mxu1 %v1109_v0 }
 0x142   :  { %912 = vmatpush3.bf16.msra.mxu1 %v989_v58 }
 0x143   :  { %937 = vmatprep.subr.bf16.mxu1 %v1109_v0 }
 0x1f8   :  { %v233_v38 = vpop.f32.mrb[0].mxu1 }
 0x1f9   :  { %v234_v39 = vadd.f32 %v751_v37, %v233_v38  ;;  %v875_v40 = vpop.f32.mrb[1].mxu1  ;;  %v1000_v38 = vld [vmem:[#allocation4 + $0x150] sm:$0xff]  }
 0x1fa   :  { %v236_v41 = vpop.f32.mrb[2].mxu1  ;;  %v1002_v40 = vld [vmem:[#allocation4 + $0x160] sm:$0xff]  }
 0x1fb   :  { %v242_v42 = vmul.f32 1.442695, %v234_v39  ;;  %v237_v43 = vadd.f32 %v751_v37, %v236_v41  ;;  %v876_v44 = vpop.f32.mrb[3].mxu1  ;;  %vm240_vm4 = vcmp.gt.f32.partialorder %v234_v39, 0.0  ;;  %v1003_v41 = vld [vmem:[#allocation4 + $0x168] sm:$0xff]  }
 0x1fc   :  { %v784_v44 = vld [vmem:[#allocation6 + $0x4] ss:$0 sm:$0xff] }
 0x1fd   :  { %1010 = vpow2.f32 %v242_v42  ;;  %v244_v45 = vmul.f32 1.442695, %v237_v43  ;;  %vm241_vm5 = vcmp.gt.f32.partialorder %v237_v43, 0.0  ;;  %v1004_v42 = vld [vmem:[#allocation4 + $0x170] sm:$0xff]  }
 0x1ff   :  { %1012 = vpow2.f32 %v244_v45 }
 0x207   :  { %v1011_v46 = vpop.eup %1010 }
 0x208   :  { %v760_v47 = vadd.f32 -1.0, %v1011_v46 }
 0x209   :  { %v1013_v48 = vpop.eup %1012 }
 0x20a   :  { %v761_v49 = vadd.f32 -1.0, %v1013_v48  ;;  %v248_v50 = vsel %vm240_vm4, %v234_v39, %v760_v47  ;;  %v1001_v39 = vld [vmem:[#allocation4 + $0x158] sm:$0xff]  }
 0x20c   :  { %v249_v51 = vsel %vm241_vm5, %v237_v43, %v761_v49  ;;  %v1005_v43 = vld [vmem:[#allocation4 + $0x178] sm:$0xff]  }
 0x20d   :  { %v267_v52 = vpack.c.bf16 %v249_v51, %v248_v50 }
 0x20f   :  { %894 = vmatmul.mubr.bf16.vlgmr.msra.gmra.mrb[4].mxu0 %v267_v52 }
 0x210   :  { %933 = vmatprep.mubr.msk.bf16.mxu0 %vm1110_vm0, %v1109_v0  ;;  %918 = vmatpush3.bf16.msra.mxu0 %v990_v59  ;;  %v795_v59 = vld [vmem:[#allocation6 + $0x5] ss:$0 sm:$0xff] }
 0x211   :  { %919 = vmatprep.subr.bf16.mxu0 %v1109_v0 }
 0x214   :  { %920 = vmatpush3.bf16.msra.mxu0 %v991_v60 }
 0x215   :  { %921 = vmatprep.subr.bf16.mxu0 %v1109_v0 }
 0x218   :  { %922 = vmatpush3.bf16.msra.mxu0 %v992_v14 }
 0x219   :  { %923 = vmatprep.subr.bf16.mxu0 %v1109_v0 }
 0x21c   :  { %924 = vmatpush3.bf16.msra.mxu0 %v993_v15 }
 0x21d   :  { %925 = vmatprep.subr.bf16.mxu0 %v1109_v0 }
 0x220   :  { %926 = vmatpush3.bf16.msra.mxu0 %v994_v16 }
 0x221   :  { %927 = vmatprep.subr.bf16.mxu0 %v1109_v0 }
 0x224   :  { %928 = vmatpush3.bf16.msra.mxu0 %v995_v17 }
 0x225   :  { %929 = vmatprep.subr.bf16.mxu0 %v1109_v0 }
 0x228   :  { %930 = vmatpush3.bf16.msra.mxu0 %v996_v18 }
 0x229   :  { %931 = vmatprep.subr.bf16.mxu0 %v1109_v0 }
 0x22c   :  { %932 = vmatpush3.bf16.msra.mxu0 %v997_v19 }
 0x2e2   :  { %v354_v62 = vpop.f32.mrb[4].mxu0 }
 0x2e3   :  { %v355_v63 = vadd.f32 %v762_v61, %v354_v62  ;;  %v895_v1 = vpop.f32.mrb[5].mxu0 }
 0x2e4   :  { %v357_v2 = vpop.f32.mrb[6].mxu0 }
 0x2e5   :  { %v363_v3 = vmul.f32 1.442695, %v355_v63  ;;  %v358_v4 = vadd.f32 %v762_v61, %v357_v2  ;;  %v896_v5 = vpop.f32.mrb[7].mxu0  ;;  %vm361_vm6 = vcmp.gt.f32.partialorder %v355_v63, 0.0 }
 0x2e7   :  { %1014 = vpow2.f32 %v363_v3  ;;  %v365_v6 = vmul.f32 1.442695, %v358_v4  ;;  %vm362_vm7 = vcmp.gt.f32.partialorder %v358_v4, 0.0 }
 0x2e9   :  { %1016 = vpow2.f32 %v365_v6 }
 0x2f1   :  { %v1015_v7 = vpop.eup %1014 }
 0x2f2   :  { %v771_v8 = vadd.f32 -1.0, %v1015_v7 }
 0x2f3   :  { %v1017_v9 = vpop.eup %1016 }
 0x2f4   :  { %v772_v10 = vadd.f32 -1.0, %v1017_v9  ;;  %v369_v11 = vsel %vm361_vm6, %v355_v63, %v771_v8 }
 0x2f6   :  { %v370_v12 = vsel %vm362_vm7, %v358_v4, %v772_v10 }
 0x2f7   :  { %v388_v13 = vpack.c.bf16 %v370_v12, %v369_v11 }
 0x2f9   :  { %914 = vmatmul.mubr.bf16.vlgmr.msra.gmra.mrb[4].mxu1 %v388_v13 }
 0x2fa   :  { %953 = vmatprep.mubr.msk.bf16.mxu1 %vm1110_vm0, %v1109_v0  ;;  %938 = vmatpush3.bf16.msra.mxu1 %v998_v20 }
 0x2fb   :  { %939 = vmatprep.subr.bf16.mxu1 %v1109_v0 }
 0x2fe   :  { %940 = vmatpush3.bf16.msra.mxu1 %v999_v21 }
 0x2ff   :  { %941 = vmatprep.subr.bf16.mxu1 %v1109_v0 }
 0x302   :  { %942 = vmatpush3.bf16.msra.mxu1 %v1000_v38 }
 0x303   :  { %943 = vmatprep.subr.bf16.mxu1 %v1109_v0 }
 0x306   :  { %944 = vmatpush3.bf16.msra.mxu1 %v1001_v39 }
 0x307   :  { %945 = vmatprep.subr.bf16.mxu1 %v1109_v0 }
 0x30a   :  { %946 = vmatpush3.bf16.msra.mxu1 %v1002_v40 }
 0x30b   :  { %947 = vmatprep.subr.bf16.mxu1 %v1109_v0 }
 0x30e   :  { %948 = vmatpush3.bf16.msra.mxu1 %v1003_v41 }
 0x30f   :  { %949 = vmatprep.subr.bf16.mxu1 %v1109_v0 }
 0x312   :  { %950 = vmatpush3.bf16.msra.mxu1 %v1004_v42 }
 0x313   :  { %951 = vmatprep.subr.bf16.mxu1 %v1109_v0 }
 0x316   :  { %952 = vmatpush3.bf16.msra.mxu1 %v1005_v43 }
 0x3cc   :  { %v475_v23 = vpop.f32.mrb[4].mxu1 }
 0x3cd   :  { %v476_v24 = vadd.f32 %v773_v22, %v475_v23  ;;  %v915_v25 = vpop.f32.mrb[5].mxu1 }
 0x3ce   :  { %v478_v26 = vpop.f32.mrb[6].mxu1 }
 0x3cf   :  { %v484_v27 = vmul.f32 1.442695, %v476_v24  ;;  %v479_v28 = vadd.f32 %v773_v22, %v478_v26  ;;  %v916_v29 = vpop.f32.mrb[7].mxu1  ;;  %vm482_vm8 = vcmp.gt.f32.partialorder %v476_v24, 0.0 }
 0x3d1   :  { %1018 = vpow2.f32 %v484_v27  ;;  %v486_v30 = vmul.f32 1.442695, %v479_v28  ;;  %vm483_vm9 = vcmp.gt.f32.partialorder %v479_v28, 0.0 }
 0x3d3   :  { %1020 = vpow2.f32 %v486_v30 }
 0x3db   :  { %v1019_v31 = vpop.eup %1018 }
 0x3dc   :  { %v782_v32 = vadd.f32 -1.0, %v1019_v31 }
 0x3dd   :  { %v1021_v33 = vpop.eup %1020 }
 0x3de   :  { %v783_v34 = vadd.f32 -1.0, %v1021_v33  ;;  %v490_v35 = vsel %vm482_vm8, %v476_v24, %v782_v32 }
 0x3e0   :  { %v491_v36 = vsel %vm483_vm9, %v479_v28, %v783_v34 }
 0x3e1   :  { %v509_v37 = vpack.c.bf16 %v491_v36, %v490_v35 }
 0x3e3   :  { %934 = vmatmul.mubr.bf16.vlgmr.msra.gmra.mrb[8].mxu0 %v509_v37 }
 0x4b6   :  { %v596_v45 = vpop.f32.mrb[8].mxu0 }
 0x4b7   :  { %v597_v46 = vadd.f32 %v784_v44, %v596_v45  ;;  %v935_v47 = vpop.f32.mrb[9].mxu0 }
 0x4b8   :  { %v599_v48 = vpop.f32.mrb[10].mxu0 }
 0x4b9   :  { %v605_v49 = vmul.f32 1.442695, %v597_v46  ;;  %v600_v50 = vadd.f32 %v784_v44, %v599_v48  ;;  %v936_v51 = vpop.f32.mrb[11].mxu0  ;;  %vm603_vm10 = vcmp.gt.f32.partialorder %v597_v46, 0.0 }
 0x4bb   :  { %1022 = vpow2.f32 %v605_v49  ;;  %v607_v52 = vmul.f32 1.442695, %v600_v50  ;;  %vm604_vm11 = vcmp.gt.f32.partialorder %v600_v50, 0.0 }
 0x4bd   :  { %1024 = vpow2.f32 %v607_v52 }
 0x4c5   :  { %v1023_v53 = vpop.eup %1022 }
 0x4c6   :  { %v793_v54 = vadd.f32 -1.0, %v1023_v53 }
 0x4c7   :  { %v1025_v55 = vpop.eup %1024 }
 0x4c8   :  { %v794_v56 = vadd.f32 -1.0, %v1025_v55  ;;  %v611_v0 = vsel %vm603_vm10, %v597_v46, %v793_v54 }
 0x4ca   :  { %v612_v57 = vsel %vm604_vm11, %v600_v50, %v794_v56 }
 0x4cb   :  { %v630_v58 = vpack.c.bf16 %v612_v57, %v611_v0 }
 0x4cd   :  { %954 = vmatmul.mubr.bf16.vlgmr.msra.gmra.mrb[8].mxu1 %v630_v58 }
 0x5a0   :  { %v717_v60 = vpop.f32.mrb[8].mxu1 }
 0x5a1   :  { %v718_v61 = vadd.f32 %v795_v59, %v717_v60  ;;  %v955_v62 = vpop.f32.mrb[9].mxu1 }
 0x5a2   :  { %v720_v63 = vpop.f32.mrb[10].mxu1 }
 0x5a3   :  { %v724_v1 = vsub.f32 0.0, %v718_v61  ;;  %v721_v2 = vadd.f32 %v795_v59, %v720_v63  ;;  %v956_v3 = vpop.f32.mrb[11].mxu1 }
 0x5a5   :  { %v726_v4 = vmul.f32 1.442695, %v724_v1  ;;  %v725_v5 = vsub.f32 0.0, %v721_v2 }
 0x5a7   :  { %1026 = vpow2.f32 %v726_v4  ;;  %v728_v6 = vmul.f32 1.442695, %v725_v5 }
 0x5a9   :  { %1028 = vpow2.f32 %v728_v6 }
 0x5b1   :  { %v1027_v7 = vpop.eup %1026 }
 0x5b2   :  { %v730_v8 = vadd.f32 1.0, %v1027_v7 }
 0x5b3   :  { %v1029_v9 = vpop.eup %1028 }
 0x5b4   :  { %1030 = vrcp.f32 %v730_v8  ;;  %v731_v10 = vadd.f32 1.0, %v1029_v9 }
 0x5b6   :  { %1032 = vrcp.f32 %v731_v10 }
 0x5be   :  { %v1031_v11 = vpop.eup %1030 }
 0x5bf   :  { %737 = vst.msk [vmem:[%s1236_s3] sm:$0xff] %vm736_vm12, %v1031_v11 }
 0x5c0   :  { %v1033_v12 = vpop.eup %1032 }
 0x5c1   :  { %738 = vst.msk [vmem:[%s1236_s3 + $0x8] sm:$0xff] %vm736_vm12, %v1033_v12 }
 0x5c2   :  { %743 = vsyncpa [#allocation3], 1 }
 0x5c3   :  { %744 = vsyncpa [#allocation5], 1 }

</bundles_post_ra>
